<compile_context>
chip_gen: v6e
topology: v6e:2x2x1
jax: 0.10.0
libtpu: 0.0.40
codegen_flags: <defaults>
</compile_context>

<pallas_src>
import functools

import jax
import jax.numpy as jnp
from jax import lax
from jax.experimental import pallas as pl
from jax.experimental.pallas import tpu as pltpu


def _basic_block_kernel(x_ref, w1_ref, w2_ref, s1_ref, t1_ref, s2_ref, t2_ref,
                        out_ref, scr1, scr2):
    """One batch element per grid step; rows are lane-dense (W*C / W*P)."""
    H = x_ref.shape[1]
    WC = x_ref.shape[2]          # W * Cin
    WP = out_ref.shape[2]        # W * planes

    x = x_ref[0]                 # (H, W*C) float32 (kept exact for residual)

    # H-padded bf16 copy of x for conv1; rows 0 and H+1 are the zero padding.
    # Only the two border rows are (re)written each step (cheap), which keeps
    # the kernel correct under megacore "parallel" sharding of the batch axis;
    # the interior rows are fully overwritten every step.
    zrow1 = jnp.zeros((1, WC), scr1.dtype)
    scr1[0:1, :] = zrow1
    scr1[H + 1:H + 2, :] = zrow1
    scr1[1:H + 1, :] = x.astype(scr1.dtype)

    # conv1: 3 MXU matmuls (one per kernel row dy), K = W*C, f32 accumulation.
    acc1 = jnp.zeros((H, WP), jnp.float32)
    for dy in range(3):
        acc1 = acc1 + jnp.dot(scr1[dy:dy + H, :], w1_ref[dy],
                              preferred_element_type=jnp.float32)
    # bn1 (folded per-channel scale/shift, tiled across W) + relu
    out1 = jnp.maximum(acc1 * s1_ref[...] + t1_ref[...], 0.0)

    # H-padded bf16 copy of the intermediate for conv2.
    zrow2 = jnp.zeros((1, WP), scr2.dtype)
    scr2[0:1, :] = zrow2
    scr2[H + 1:H + 2, :] = zrow2
    scr2[1:H + 1, :] = out1.astype(scr2.dtype)

    # conv2: same banded formulation.
    acc2 = jnp.zeros((H, WP), jnp.float32)
    for dy in range(3):
        acc2 = acc2 + jnp.dot(scr2[dy:dy + H, :], w2_ref[dy],
                              preferred_element_type=jnp.float32)
    # bn2 + residual (exact f32 x, since Cin == planes) + relu
    out2 = acc2 * s2_ref[...] + t2_ref[...] + x
    out_ref[0] = jnp.maximum(out2, 0.0)


def _banded_weights(w_hwio, W, dtype):
    """(3, 3, Cin, P) conv weights -> (3, W*Cin, W*P) banded matrices.

    B[dy][u*Cin + c, w*P + p] = w_hwio[dy, dx, c, p] with dx = u - w + 1 when
    0 <= dx < 3, else 0.  The row convolution along W (padding=1) then becomes
    one matmul per dy:  out_rows[h, :] += padded_rows[h + dy, :] @ B[dy].
    Out-of-range columns are dropped by the band, which is exactly zero
    padding along W, so the VMEM scratch only needs zero padding along H.
    """
    kh, kw, cin, p = w_hwio.shape
    blocks = []
    for dy in range(kh):
        b = jnp.zeros((W * cin, W * p), jnp.float32)
        for dx in range(kw):
            band = jnp.eye(W, W, k=1 - dx, dtype=jnp.float32)  # ones at (w+dx-1, w)
            b = b + jnp.kron(band, w_hwio[dy, dx].astype(jnp.float32))
        blocks.append(b)
    return jnp.stack(blocks, axis=0).astype(dtype)


@functools.partial(jax.jit, static_argnames=("eps",))
def basic_block_nhwc(x, w1, w2, g1, be1, m1, v1, g2, be2, m2, v2, eps=1e-5):
    """x: (N, H, W, C) float32; w1/w2: (3, 3, Cin, P) float32 (HWIO)."""
    N, H, W, C = x.shape
    P = w1.shape[-1]
    assert C == P and w2.shape[-1] == P, \
        "downsample is None => inplanes must equal planes"

    # Fold BN (inference mode) into per-channel scale/shift, tiled across W so
    # it broadcasts over the lane-dense (H, W*P) layout (lane index = w*P + p).
    inv1 = 1.0 / jnp.sqrt(v1 + eps)
    inv2 = 1.0 / jnp.sqrt(v2 + eps)
    s1 = jnp.tile(g1 * inv1, W).reshape(1, W * P)
    t1 = jnp.tile(be1 - m1 * g1 * inv1, W).reshape(1, W * P)
    s2 = jnp.tile(g2 * inv2, W).reshape(1, W * P)
    t2 = jnp.tile(be2 - m2 * g2 * inv2, W).reshape(1, W * P)

    # Banded bf16 weights: dx and W folded into the MXU contraction dimension.
    b1w = _banded_weights(w1, W, jnp.bfloat16)   # (3, W*C, W*P)
    b2w = _banded_weights(w2, W, jnp.bfloat16)   # (3, W*P, W*P)

    x2d = x.reshape(N, H, W * C)                 # lane-dense input rows

    # Explicit VMEM budget: double-buffered I/O blocks + weights + scratch,
    # with 4x headroom; clamped to stay under every chip's physical VMEM.
    blk_bytes = (H * W * C * 4 + H * W * P * 4           # x block + out block
                 + 2 * 3 * W * C * W * P * 2             # banded bf16 weights
                 + 4 * W * P * 4)                        # scale/shift rows
    scr_bytes = (H + 2) * W * (C + P) * 2
    vmem_limit = int(min(max(4 * (2 * blk_bytes + scr_bytes), 8 << 20), 48 << 20))

    out2d = pl.pallas_call(
        _basic_block_kernel,
        out_shape=jax.ShapeDtypeStruct((N, H, W * P), jnp.float32),
        grid_spec=pltpu.PrefetchScalarGridSpec(
            num_scalar_prefetch=0,
            grid=(N,),
            in_specs=[
                pl.BlockSpec((1, H, W * C), lambda n: (n, 0, 0)),
                pl.BlockSpec((3, W * C, W * P), lambda n: (0, 0, 0)),
                pl.BlockSpec((3, W * P, W * P), lambda n: (0, 0, 0)),
                pl.BlockSpec((1, W * P), lambda n: (0, 0)),
                pl.BlockSpec((1, W * P), lambda n: (0, 0)),
                pl.BlockSpec((1, W * P), lambda n: (0, 0)),
                pl.BlockSpec((1, W * P), lambda n: (0, 0)),
            ],
            out_specs=pl.BlockSpec((1, H, W * P), lambda n: (n, 0, 0)),
            scratch_shapes=[pltpu.VMEM((H + 2, W * C), jnp.bfloat16),
                            pltpu.VMEM((H + 2, W * P), jnp.bfloat16)],
        ),
        compiler_params=pltpu.CompilerParams(
            dimension_semantics=("parallel",),
            vmem_limit_bytes=vmem_limit),
    )(x2d, b1w, b2w, s1, t1, s2, t2)

    return out2d.reshape(N, H, W, P)


def basic_block_nchw(x_nchw, w1_oihw, w2_oihw, bn1, bn2, eps=1e-5):
    """PyTorch-layout entry point: x NCHW, weights OIHW."""
    x = jnp.transpose(x_nchw, (0, 2, 3, 1))           # NCHW -> NHWC
    w1 = jnp.transpose(w1_oihw, (2, 3, 1, 0))         # OIHW -> HWIO
    w2 = jnp.transpose(w2_oihw, (2, 3, 1, 0))
    out = basic_block_nhwc(x, w1, w2, *bn1, *bn2, eps=eps)
    return jnp.transpose(out, (0, 3, 1, 2))           # NHWC -> NCHW


def _reference_nchw(x, w1, w2, bn1, bn2, eps=1e-5):
    """Pure-JAX reference (lax.conv) mirroring the kernel's bf16 matmul inputs
    (f32 accumulation, f32 BN/residual)."""
    def bn(y, params):
        g, b, m, v = params
        sh = (1, -1, 1, 1)
        return (y - m.reshape(sh)) / jnp.sqrt(v.reshape(sh) + eps) \
            * g.reshape(sh) + b.reshape(sh)

    dn = ("NCHW", "OIHW", "NCHW")
    w1b = w1.astype(jnp.bfloat16)
    w2b = w2.astype(jnp.bfloat16)
    out = lax.conv_general_dilated(x.astype(jnp.bfloat16), w1b, (1, 1), "SAME",
                                   dimension_numbers=dn,
                                   preferred_element_type=jnp.float32)
    out = jnp.maximum(bn(out, bn1), 0.0)
    out = lax.conv_general_dilated(out.astype(jnp.bfloat16), w2b, (1, 1),
                                   "SAME", dimension_numbers=dn,
                                   preferred_element_type=jnp.float32)
    out = bn(out, bn2) + x
    return jnp.maximum(out, 0.0)


if __name__ == "__main__":
    import numpy as np

    N, C, H, W = 2, 4, 16, 16          # inplanes == planes == 4, stride == 1
    inplanes = planes = C

    key = jax.random.PRNGKey(0)
    kx, k1, k2 = jax.random.split(key, 3)

    x_nchw = jax.random.normal(kx, (N, C, H, W), jnp.float32)

    # Kaiming normal, mode='fan_out', nonlinearity='relu': std = sqrt(2/(Cout*k*k))
    std = float(np.sqrt(2.0 / (planes * 3 * 3)))
    w1_oihw = std * jax.random.normal(k1, (planes, inplanes, 3, 3), jnp.float32)
    w2_oihw = std * jax.random.normal(k2, (planes, planes, 3, 3), jnp.float32)

    # BatchNorm2d init: weight=1, bias=0, running_mean=0, running_var=1
    bn1 = (jnp.ones((planes,), jnp.float32), jnp.zeros((planes,), jnp.float32),
           jnp.zeros((planes,), jnp.float32), jnp.ones((planes,), jnp.float32))
    bn2 = (jnp.ones((planes,), jnp.float32), jnp.zeros((planes,), jnp.float32),
           jnp.zeros((planes,), jnp.float32), jnp.ones((planes,), jnp.float32))

    out = basic_block_nchw(x_nchw, w1_oihw, w2_oihw, bn1, bn2)
    out = jax.block_until_ready(out)

    ref = _reference_nchw(x_nchw, w1_oihw, w2_oihw, bn1, bn2)
    # Tolerance accounts for bf16 matmul inputs (f32 accumulation) and the
    # bf16 rounding of the conv1->conv2 intermediate near rounding boundaries.
    np.testing.assert_allclose(np.asarray(out), np.asarray(ref),
                               rtol=1e-2, atol=1e-2)

    print("KERNEL_OK")
</pallas_src>

<mosaic_0001>
module attributes {stable_mosaic.version = 11 : i64} {
  func.func @_basic_block_kernel(%arg0: i32, %arg1: memref<1x16x64xf32, #tpu.memory_space<vmem>>, %arg2: memref<3x64x64xbf16, #tpu.memory_space<vmem>>, %arg3: memref<3x64x64xbf16, #tpu.memory_space<vmem>>, %arg4: memref<1x64xf32, #tpu.memory_space<vmem>>, %arg5: memref<1x64xf32, #tpu.memory_space<vmem>>, %arg6: memref<1x64xf32, #tpu.memory_space<vmem>>, %arg7: memref<1x64xf32, #tpu.memory_space<vmem>>, %arg8: memref<1x16x64xf32, #tpu.memory_space<vmem>>, %arg9: memref<18x64xbf16, #tpu.memory_space<vmem>>, %arg10: memref<18x64xbf16, #tpu.memory_space<vmem>>) attributes {dimension_semantics = [#tpu.dimension_semantics<parallel>], iteration_bounds = array<i64: 2>, scalar_prefetch = 0 : i64, scratch_operands = 2 : i64, tpu.core_type = #tpu.core_type<tc>, window_params = [{transform_indices = @transform_0, window_bounds = array<i64: 1, 16, 64>}, {pipeline_mode = #tpu.pipeline_mode<synchronous>, transform_indices = @transform_1, window_bounds = array<i64: 3, 64, 64>}, {pipeline_mode = #tpu.pipeline_mode<synchronous>, transform_indices = @transform_2, window_bounds = array<i64: 3, 64, 64>}, {pipeline_mode = #tpu.pipeline_mode<synchronous>, transform_indices = @transform_3, window_bounds = array<i64: 1, 64>}, {pipeline_mode = #tpu.pipeline_mode<synchronous>, transform_indices = @transform_4, window_bounds = array<i64: 1, 64>}, {pipeline_mode = #tpu.pipeline_mode<synchronous>, transform_indices = @transform_5, window_bounds = array<i64: 1, 64>}, {pipeline_mode = #tpu.pipeline_mode<synchronous>, transform_indices = @transform_6, window_bounds = array<i64: 1, 64>}, {transform_indices = @transform_7, window_bounds = array<i64: 1, 16, 64>}]} {
    %c0 = arith.constant 0 : index
    %c0_0 = arith.constant 0 : index
    %c0_1 = arith.constant 0 : index
    %0 = vector.load %arg1[%c0, %c0_0, %c0_1] : memref<1x16x64xf32, #tpu.memory_space<vmem>>, vector<1x16x64xf32>
    %1 = vector.shape_cast %0 : vector<1x16x64xf32> to vector<16x64xf32>
    %cst = arith.constant 0.000000e+00 : bf16
    %2 = vector.broadcast %cst : bf16 to vector<1x64xbf16>
    %c0_2 = arith.constant 0 : index
    %c0_3 = arith.constant 0 : index
    %3 = vector.load %arg9[%c0_2, %c0_3] : memref<18x64xbf16, #tpu.memory_space<vmem>>, vector<1x64xbf16>
    tpu.vector_store %arg9[%c0_2, %c0_3], %2 {strides = array<i32>} : memref<18x64xbf16, #tpu.memory_space<vmem>>, vector<1x64xbf16>,
    %c17 = arith.constant 17 : index
    %c0_4 = arith.constant 0 : index
    %4 = vector.load %arg9[%c17, %c0_4] : memref<18x64xbf16, #tpu.memory_space<vmem>>, vector<1x64xbf16>
    tpu.vector_store %arg9[%c17, %c0_4], %2 {strides = array<i32>} : memref<18x64xbf16, #tpu.memory_space<vmem>>, vector<1x64xbf16>,
    %5 = arith.truncf %1 : vector<16x64xf32> to vector<16x64xbf16>
    %c1 = arith.constant 1 : index
    %c0_5 = arith.constant 0 : index
    %6 = vector.load %arg9[%c1, %c0_5] : memref<18x64xbf16, #tpu.memory_space<vmem>>, vector<16x64xbf16>
    tpu.vector_store %arg9[%c1, %c0_5], %5 {strides = array<i32>} : memref<18x64xbf16, #tpu.memory_space<vmem>>, vector<16x64xbf16>,
    %cst_6 = arith.constant 0.000000e+00 : f32
    %7 = vector.broadcast %cst_6 : f32 to vector<16x64xf32>
    %c0_7 = arith.constant 0 : index
    %c0_8 = arith.constant 0 : index
    %8 = vector.load %arg9[%c0_7, %c0_8] : memref<18x64xbf16, #tpu.memory_space<vmem>>, vector<16x64xbf16>
    %c0_9 = arith.constant 0 : index
    %c0_10 = arith.constant 0 : index
    %c0_11 = arith.constant 0 : index
    %9 = vector.load %arg2[%c0_9, %c0_10, %c0_11] : memref<3x64x64xbf16, #tpu.memory_space<vmem>>, vector<1x64x64xbf16>
    %10 = vector.shape_cast %9 : vector<1x64x64xbf16> to vector<64x64xbf16>
    %cst_12 = arith.constant dense<0.000000e+00> : vector<16x64xf32>
    %11 = tpu.matmul %8, %10, %cst_12 {dimension_numbers = #tpu.dot_dimension_numbers<[1], [0], [0], [1], [0, 0, 1, 1], [], []>} : vector<16x64xbf16>, vector<64x64xbf16>, vector<16x64xf32> -> vector<16x64xf32>
    %12 = arith.addf %7, %11 : vector<16x64xf32>
    %c1_13 = arith.constant 1 : index
    %c0_14 = arith.constant 0 : index
    %13 = vector.load %arg9[%c1_13, %c0_14] : memref<18x64xbf16, #tpu.memory_space<vmem>>, vector<16x64xbf16>
    %c1_15 = arith.constant 1 : index
    %c0_16 = arith.constant 0 : index
    %c0_17 = arith.constant 0 : index
    %14 = vector.load %arg2[%c1_15, %c0_16, %c0_17] : memref<3x64x64xbf16, #tpu.memory_space<vmem>>, vector<1x64x64xbf16>
    %15 = vector.shape_cast %14 : vector<1x64x64xbf16> to vector<64x64xbf16>
    %cst_18 = arith.constant dense<0.000000e+00> : vector<16x64xf32>
    %16 = tpu.matmul %13, %15, %cst_18 {dimension_numbers = #tpu.dot_dimension_numbers<[1], [0], [0], [1], [0, 0, 1, 1], [], []>} : vector<16x64xbf16>, vector<64x64xbf16>, vector<16x64xf32> -> vector<16x64xf32>
    %17 = arith.addf %12, %16 : vector<16x64xf32>
    %c2 = arith.constant 2 : index
    %c0_19 = arith.constant 0 : index
    %18 = vector.load %arg9[%c2, %c0_19] : memref<18x64xbf16, #tpu.memory_space<vmem>>, vector<16x64xbf16>
    %c2_20 = arith.constant 2 : index
    %c0_21 = arith.constant 0 : index
    %c0_22 = arith.constant 0 : index
    %19 = vector.load %arg2[%c2_20, %c0_21, %c0_22] : memref<3x64x64xbf16, #tpu.memory_space<vmem>>, vector<1x64x64xbf16>
    %20 = vector.shape_cast %19 : vector<1x64x64xbf16> to vector<64x64xbf16>
    %cst_23 = arith.constant dense<0.000000e+00> : vector<16x64xf32>
    %21 = tpu.matmul %18, %20, %cst_23 {dimension_numbers = #tpu.dot_dimension_numbers<[1], [0], [0], [1], [0, 0, 1, 1], [], []>} : vector<16x64xbf16>, vector<64x64xbf16>, vector<16x64xf32> -> vector<16x64xf32>
    %22 = arith.addf %17, %21 : vector<16x64xf32>
    %c0_24 = arith.constant 0 : index
    %c0_25 = arith.constant 0 : index
    %23 = vector.load %arg4[%c0_24, %c0_25] : memref<1x64xf32, #tpu.memory_space<vmem>>, vector<1x64xf32>
    %24 = vector.broadcast %23 : vector<1x64xf32> to vector<16x64xf32>
    %25 = arith.mulf %22, %24 : vector<16x64xf32>
    %c0_26 = arith.constant 0 : index
    %c0_27 = arith.constant 0 : index
    %26 = vector.load %arg5[%c0_26, %c0_27] : memref<1x64xf32, #tpu.memory_space<vmem>>, vector<1x64xf32>
    %27 = vector.broadcast %26 : vector<1x64xf32> to vector<16x64xf32>
    %28 = arith.addf %25, %27 : vector<16x64xf32>
    %cst_28 = arith.constant 0.000000e+00 : f32
    %29 = vector.broadcast %cst_28 : f32 to vector<16x64xf32>
    %30 = arith.maximumf %28, %29 : vector<16x64xf32>
    %cst_29 = arith.constant 0.000000e+00 : bf16
    %31 = vector.broadcast %cst_29 : bf16 to vector<1x64xbf16>
    %c0_30 = arith.constant 0 : index
    %c0_31 = arith.constant 0 : index
    %32 = vector.load %arg10[%c0_30, %c0_31] : memref<18x64xbf16, #tpu.memory_space<vmem>>, vector<1x64xbf16>
    tpu.vector_store %arg10[%c0_30, %c0_31], %31 {strides = array<i32>} : memref<18x64xbf16, #tpu.memory_space<vmem>>, vector<1x64xbf16>,
    %c17_32 = arith.constant 17 : index
    %c0_33 = arith.constant 0 : index
    %33 = vector.load %arg10[%c17_32, %c0_33] : memref<18x64xbf16, #tpu.memory_space<vmem>>, vector<1x64xbf16>
    tpu.vector_store %arg10[%c17_32, %c0_33], %31 {strides = array<i32>} : memref<18x64xbf16, #tpu.memory_space<vmem>>, vector<1x64xbf16>,
    %34 = arith.truncf %30 : vector<16x64xf32> to vector<16x64xbf16>
    %c1_34 = arith.constant 1 : index
    %c0_35 = arith.constant 0 : index
    %35 = vector.load %arg10[%c1_34, %c0_35] : memref<18x64xbf16, #tpu.memory_space<vmem>>, vector<16x64xbf16>
    tpu.vector_store %arg10[%c1_34, %c0_35], %34 {strides = array<i32>} : memref<18x64xbf16, #tpu.memory_space<vmem>>, vector<16x64xbf16>,
    %cst_36 = arith.constant 0.000000e+00 : f32
    %36 = vector.broadcast %cst_36 : f32 to vector<16x64xf32>
    %c0_37 = arith.constant 0 : index
    %c0_38 = arith.constant 0 : index
    %37 = vector.load %arg10[%c0_37, %c0_38] : memref<18x64xbf16, #tpu.memory_space<vmem>>, vector<16x64xbf16>
    %c0_39 = arith.constant 0 : index
    %c0_40 = arith.constant 0 : index
    %c0_41 = arith.constant 0 : index
    %38 = vector.load %arg3[%c0_39, %c0_40, %c0_41] : memref<3x64x64xbf16, #tpu.memory_space<vmem>>, vector<1x64x64xbf16>
    %39 = vector.shape_cast %38 : vector<1x64x64xbf16> to vector<64x64xbf16>
    %cst_42 = arith.constant dense<0.000000e+00> : vector<16x64xf32>
    %40 = tpu.matmul %37, %39, %cst_42 {dimension_numbers = #tpu.dot_dimension_numbers<[1], [0], [0], [1], [0, 0, 1, 1], [], []>} : vector<16x64xbf16>, vector<64x64xbf16>, vector<16x64xf32> -> vector<16x64xf32>
    %41 = arith.addf %36, %40 : vector<16x64xf32>
    %c1_43 = arith.constant 1 : index
    %c0_44 = arith.constant 0 : index
    %42 = vector.load %arg10[%c1_43, %c0_44] : memref<18x64xbf16, #tpu.memory_space<vmem>>, vector<16x64xbf16>
    %c1_45 = arith.constant 1 : index
    %c0_46 = arith.constant 0 : index
    %c0_47 = arith.constant 0 : index
    %43 = vector.load %arg3[%c1_45, %c0_46, %c0_47] : memref<3x64x64xbf16, #tpu.memory_space<vmem>>, vector<1x64x64xbf16>
    %44 = vector.shape_cast %43 : vector<1x64x64xbf16> to vector<64x64xbf16>
    %cst_48 = arith.constant dense<0.000000e+00> : vector<16x64xf32>
    %45 = tpu.matmul %42, %44, %cst_48 {dimension_numbers = #tpu.dot_dimension_numbers<[1], [0], [0], [1], [0, 0, 1, 1], [], []>} : vector<16x64xbf16>, vector<64x64xbf16>, vector<16x64xf32> -> vector<16x64xf32>
    %46 = arith.addf %41, %45 : vector<16x64xf32>
    %c2_49 = arith.constant 2 : index
    %c0_50 = arith.constant 0 : index
    %47 = vector.load %arg10[%c2_49, %c0_50] : memref<18x64xbf16, #tpu.memory_space<vmem>>, vector<16x64xbf16>
    %c2_51 = arith.constant 2 : index
    %c0_52 = arith.constant 0 : index
    %c0_53 = arith.constant 0 : index
    %48 = vector.load %arg3[%c2_51, %c0_52, %c0_53] : memref<3x64x64xbf16, #tpu.memory_space<vmem>>, vector<1x64x64xbf16>
    %49 = vector.shape_cast %48 : vector<1x64x64xbf16> to vector<64x64xbf16>
    %cst_54 = arith.constant dense<0.000000e+00> : vector<16x64xf32>
    %50 = tpu.matmul %47, %49, %cst_54 {dimension_numbers = #tpu.dot_dimension_numbers<[1], [0], [0], [1], [0, 0, 1, 1], [], []>} : vector<16x64xbf16>, vector<64x64xbf16>, vector<16x64xf32> -> vector<16x64xf32>
    %51 = arith.addf %46, %50 : vector<16x64xf32>
    %c0_55 = arith.constant 0 : index
    %c0_56 = arith.constant 0 : index
    %52 = vector.load %arg6[%c0_55, %c0_56] : memref<1x64xf32, #tpu.memory_space<vmem>>, vector<1x64xf32>
    %53 = vector.broadcast %52 : vector<1x64xf32> to vector<16x64xf32>
    %54 = arith.mulf %51, %53 : vector<16x64xf32>
    %c0_57 = arith.constant 0 : index
    %c0_58 = arith.constant 0 : index
    %55 = vector.load %arg7[%c0_57, %c0_58] : memref<1x64xf32, #tpu.memory_space<vmem>>, vector<1x64xf32>
    %56 = vector.broadcast %55 : vector<1x64xf32> to vector<16x64xf32>
    %57 = arith.addf %54, %56 : vector<16x64xf32>
    %58 = arith.addf %57, %1 : vector<16x64xf32>
    %cst_59 = arith.constant 0.000000e+00 : f32
    %59 = vector.broadcast %cst_59 : f32 to vector<16x64xf32>
    %60 = arith.maximumf %58, %59 : vector<16x64xf32>
    %c0_60 = arith.constant 0 : index
    %c0_61 = arith.constant 0 : index
    %c0_62 = arith.constant 0 : index
    %61 = vector.load %arg8[%c0_60, %c0_61, %c0_62] : memref<1x16x64xf32, #tpu.memory_space<vmem>>, vector<1x16x64xf32>
    %62 = vector.shape_cast %61 : vector<1x16x64xf32> to vector<16x64xf32>
    %63 = vector.shape_cast %60 : vector<16x64xf32> to vector<1x16x64xf32>
    tpu.vector_store %arg8[%c0_60, %c0_61, %c0_62], %63 {strides = array<i32>} : memref<1x16x64xf32, #tpu.memory_space<vmem>>, vector<1x16x64xf32>,
    return
  }
  func.func @transform_0(%arg0: i32) -> (i32, i32, i32) {
    %c0_i32 = arith.constant 0 : i32
    %c0_i32_0 = arith.constant 0 : i32
    %c0_i32_1 = arith.constant 0 : i32
    return %arg0, %c0_i32, %c0_i32_0 : i32, i32, i32
  }
  func.func @transform_1(%arg0: i32) -> (i32, i32, i32) {
    %c0_i32 = arith.constant 0 : i32
    %c0_i32_0 = arith.constant 0 : i32
    %c0_i32_1 = arith.constant 0 : i32
    %c0_i32_2 = arith.constant 0 : i32
    return %c0_i32, %c0_i32_0, %c0_i32_1 : i32, i32, i32
  }
  func.func @transform_2(%arg0: i32) -> (i32, i32, i32) {
    %c0_i32 = arith.constant 0 : i32
    %c0_i32_0 = arith.constant 0 : i32
    %c0_i32_1 = arith.constant 0 : i32
    %c0_i32_2 = arith.constant 0 : i32
    return %c0_i32, %c0_i32_0, %c0_i32_1 : i32, i32, i32
  }
  func.func @transform_3(%arg0: i32) -> (i32, i32) {
    %c0_i32 = arith.constant 0 : i32
    %c0_i32_0 = arith.constant 0 : i32
    %c0_i32_1 = arith.constant 0 : i32
    return %c0_i32, %c0_i32_0 : i32, i32
  }
  func.func @transform_4(%arg0: i32) -> (i32, i32) {
    %c0_i32 = arith.constant 0 : i32
    %c0_i32_0 = arith.constant 0 : i32
    %c0_i32_1 = arith.constant 0 : i32
    return %c0_i32, %c0_i32_0 : i32, i32
  }
  func.func @transform_5(%arg0: i32) -> (i32, i32) {
    %c0_i32 = arith.constant 0 : i32
    %c0_i32_0 = arith.constant 0 : i32
    %c0_i32_1 = arith.constant 0 : i32
    return %c0_i32, %c0_i32_0 : i32, i32
  }
  func.func @transform_6(%arg0: i32) -> (i32, i32) {
    %c0_i32 = arith.constant 0 : i32
    %c0_i32_0 = arith.constant 0 : i32
    %c0_i32_1 = arith.constant 0 : i32
    return %c0_i32, %c0_i32_0 : i32, i32
  }
  func.func @transform_7(%arg0: i32) -> (i32, i32, i32) {
    %c0_i32 = arith.constant 0 : i32
    %c0_i32_0 = arith.constant 0 : i32
    %c0_i32_1 = arith.constant 0 : i32
    return %arg0, %c0_i32, %c0_i32_0 : i32, i32, i32
  }
}

</mosaic_0001>

<bundles_post_ra>
// kernel: tile.23
= control target key start
LH: loop header
LB: loop body
LE: loop exit
PB: predicated region body
PF: predicated region fallthrough
CT: control target
= control target key end

     0   :  { %s28_s0 = inlined_call_operand.vmem [shape: f32[4], index: 0, kind: input, shape index: {}]   ;;  %s29_s1 = inlined_call_operand.vmem [shape: f32[16,4], index: 1, kind: output, shape index: {}]  }
   0x1   :  { %v4_v0 = vld [vmem:[%s28_s0] ss:$0 sm:$0xff] }
   0x2   :  { %5 = vst [vmem:[%s29_s1] sm:$0xff] %v4_v0  ;;  %8 = vst [vmem:[%s29_s1 + $0x8] sm:$0xff] %v4_v0 }

// kernel: tile.24
= control target key start
LH: loop header
LB: loop body
LE: loop exit
PB: predicated region body
PF: predicated region fallthrough
CT: control target
= control target key end

     0   :  { %s133_s10 = smov 60   ;;  %s134_s11 = smov 52   ;;  %vm3_vm0 = vcmask 31744   ;;  %vm9_vm1 = vcmask 523744   ;;  %vm15_vm2 = vcmask 490944   ;;  %vm21_vm3 = vcmask 458144   ;;  %s209_s0 = inlined_call_operand.vmem [shape: f32[16,4], index: 0, kind: input, shape index: {}]   ;;  %s210_s1 = inlined_call_operand.vmem [shape: f32[1,64], index: 1, kind: output, shape index: {}]  }
   0x1   :  { %v103_v0 = vld [vmem:[%s209_s0 + $0xf] sm:$0x1]   ;;  %v105_v1 = vld [vmem:[%s209_s0 + $0xd] sm:$0x1]   ;;  %v104_v2 = vld [vmem:[%s209_s0 + $0xe] sm:$0x1]  }
   0x2   :  { %7 = vrot.lane.b32.xlu0 %v103_v0, %s133_s10  ;;  %19 = vrot.lane.b32.xlu1 %v105_v1, %s134_s11  ;;  %v106_v3 = vld [vmem:[%s209_s0 + $0xc] sm:$0x1]   ;;  %s135_s16 = smov 56   ;;  %s136_s17 = smov 48   ;;  %v107_v4 = vld [vmem:[%s209_s0 + $0xb] sm:$0x1]  }
   0x3   :  { %v108_v5 = vld [vmem:[%s209_s0 + $0xa] sm:$0x1]   ;;  %v2_v6 = vld [vmem:[%s209_s0] sm:$0x1]   ;;  %s137_s24 = smov 44   ;;  %s138_s25 = smov 40  }
   0x4   :  { %4 = vst.msk [vmem:[#allocation0] sm:$0x1] %vm3_vm0, %v2_v6   ;;  %v109_v7 = vld [vmem:[%s209_s0 + $0x9] sm:$0x1]   ;;  %v110_v8 = vld [vmem:[%s209_s0 + $0x8] sm:$0x1]  }
   0x5   :  { %s139_s30 = smov 36   ;;  %s140_s2 = smov 32   ;;  %v111_v9 = vld [vmem:[%s209_s0 + $0x7] sm:$0x1]   ;;  %v112_v10 = vld [vmem:[%s209_s0 + $0x6] sm:$0x1]  }
   0x6   :  { %13 = vrot.lane.b32.xlu0 %v104_v2, %s135_s16  ;;  %25 = vrot.lane.b32.xlu1 %v106_v3, %s136_s17  ;;  %s141_s7 = smov 28   ;;  %s142_s8 = smov 24   ;;  %v113_v11 = vld [vmem:[%s209_s0 + $0x5] sm:$0x1]   ;;  %v114_v12 = vld [vmem:[%s209_s0 + $0x4] sm:$0x1]  }
   0x7   :  { %s143_s13 = smov 20   ;;  %s144_s14 = smov 16   ;;  %v115_v13 = vld [vmem:[%s209_s0 + $0x3] sm:$0x1]   ;;  %v116_v14 = vld [vmem:[%s209_s0 + $0x2] sm:$0x1]  }
   0x8   :  { %s145_s19 = smov 12   ;;  %s146_s20 = smov 8   ;;  %v117_v15 = vld [vmem:[%s209_s0 + $0x1] sm:$0x1]   ;;  %vm27_vm4 = vcmask 425344   ;;  %vm33_vm5 = vcmask 392544  }
   0x9   :  { %s147_s0 = smov 4   ;;  %vm39_vm6 = vcmask 359744   ;;  %vm45_vm7 = vcmask 326944   ;;  %vm51_vm8 = vcmask 294144   ;;  %vm57_vm9 = vcmask 261344  }
   0xa   :  { %31 = vrot.lane.b32.xlu0 %v107_v4, %s137_s24  ;;  %37 = vrot.lane.b32.xlu1 %v108_v5, %s138_s25  ;;  %vm63_vm10 = vcmask 228544   ;;  %vm69_vm11 = vcmask 195744   ;;  %vm75_vm12 = vcmask 162944   ;;  %vm81_vm13 = vcmask 130144  }
   0xb   :  { %vm87_vm14 = vcmask 97344   ;;  %vm93_vm15 = vcmask 64544  }
   0xe   :  { %43 = vrot.lane.b32.xlu0 %v109_v7, %s139_s30  ;;  %49 = vrot.lane.b32.xlu1 %v110_v8, %s140_s2 }
  0x12   :  { %55 = vrot.lane.b32.xlu0 %v111_v9, %s141_s7  ;;  %61 = vrot.lane.b32.xlu1 %v112_v10, %s142_s8 }
  0x16   :  { %67 = vrot.lane.b32.xlu0 %v113_v11, %s143_s13  ;;  %73 = vrot.lane.b32.xlu1 %v114_v12, %s144_s14 }
  0x1a   :  { %79 = vrot.lane.b32.xlu0 %v115_v13, %s145_s19  ;;  %85 = vrot.lane.b32.xlu1 %v116_v14, %s146_s20 }
  0x1e   :  { %91 = vrot.lane.b32.xlu0 %v117_v15, %s147_s0 }
  0x74   :  { %v8_v16 = vpop.permute.xlu0 %7   ;;  %v20_v17 = vpop.permute.xlu1 %19  }
  0x75   :  { %10 = vst.msk [vmem:[#allocation0] sm:$0x1] %vm9_vm1, %v8_v16  }
  0x78   :  { %v14_v18 = vpop.permute.xlu0 %13   ;;  %v26_v19 = vpop.permute.xlu1 %25  }
  0x79   :  { %16 = vst.msk [vmem:[#allocation0] sm:$0x1] %vm15_vm2, %v14_v18  }
  0x7a   :  { %22 = vst.msk [vmem:[#allocation0] sm:$0x1] %vm21_vm3, %v20_v17  }
  0x7b   :  { %28 = vst.msk [vmem:[#allocation0] sm:$0x1] %vm27_vm4, %v26_v19  }
  0x7c   :  { %v32_v20 = vpop.permute.xlu0 %31   ;;  %v38_v21 = vpop.permute.xlu1 %37  }
  0x7d   :  { %34 = vst.msk [vmem:[#allocation0] sm:$0x1] %vm33_vm5, %v32_v20  }
  0x7e   :  { %40 = vst.msk [vmem:[#allocation0] sm:$0x1] %vm39_vm6, %v38_v21  }
  0x80   :  { %v44_v22 = vpop.permute.xlu0 %43   ;;  %v50_v23 = vpop.permute.xlu1 %49  }
  0x81   :  { %46 = vst.msk [vmem:[#allocation0] sm:$0x1] %vm45_vm7, %v44_v22  }
  0x82   :  { %52 = vst.msk [vmem:[#allocation0] sm:$0x1] %vm51_vm8, %v50_v23  }
  0x84   :  { %v56_v24 = vpop.permute.xlu0 %55   ;;  %v62_v25 = vpop.permute.xlu1 %61  }
  0x85   :  { %58 = vst.msk [vmem:[#allocation0] sm:$0x1] %vm57_vm9, %v56_v24  }
  0x86   :  { %64 = vst.msk [vmem:[#allocation0] sm:$0x1] %vm63_vm10, %v62_v25  }
  0x88   :  { %v68_v26 = vpop.permute.xlu0 %67   ;;  %v74_v27 = vpop.permute.xlu1 %73  }
  0x89   :  { %70 = vst.msk [vmem:[#allocation0] sm:$0x1] %vm69_vm11, %v68_v26  }
  0x8a   :  { %76 = vst.msk [vmem:[#allocation0] sm:$0x1] %vm75_vm12, %v74_v27  }
  0x8c   :  { %v80_v28 = vpop.permute.xlu0 %79   ;;  %v86_v29 = vpop.permute.xlu1 %85  }
  0x8d   :  { %82 = vst.msk [vmem:[#allocation0] sm:$0x1] %vm81_vm13, %v80_v28  }
  0x8e   :  { %88 = vst.msk [vmem:[#allocation0] sm:$0x1] %vm87_vm14, %v86_v29  }
  0x90   :  { %v92_v30 = vpop.permute.xlu0 %91  }
  0x91   :  { %94 = vst.msk [vmem:[#allocation0] sm:$0x1] %vm93_vm15, %v92_v30  }
  0x98   :  { %v99_v31 = vld [vmem:[#allocation0] sm:$0x1] }
  0x99   :  { %102 = vst [vmem:[%s210_s1] sm:$0x1] %v99_v31 }

// kernel: basic_block_nhwc.1
= control target key start
LH: loop header
LB: loop body
LE: loop exit
PB: predicated region body
PF: predicated region fallthrough
CT: control target
= control target key end

     0   :  { %s1279_s24 = smov 0   ;;  %s1490_s0 = inlined_call_operand.vmem [shape: f32[2,16,64], index: 0, kind: input, shape index: {}]   ;;  %s1491_s1 = inlined_call_operand.vmem [shape: bf16[3,64,64], index: 1, kind: input, shape index: {}]   ;;  %s1492_s2 = inlined_call_operand.vmem [shape: bf16[3,64,64], index: 2, kind: input, shape index: {}]   ;;  %s1493_s3 = inlined_call_operand.vmem [shape: f32[1,64], index: 3, kind: input, shape index: {}]   ;;  %s1494_s4 = inlined_call_operand.vmem [shape: f32[1,64], index: 4, kind: input, shape index: {}]   ;;  %s1495_s5 = inlined_call_operand.vmem [shape: f32[1,64], index: 5, kind: input, shape index: {}]   ;;  %s1496_s6 = inlined_call_operand.vmem [shape: f32[1,64], index: 6, kind: input, shape index: {}]   ;;  %s1497_s7 = inlined_call_operand.vmem [shape: f32[2,16,64], index: 7, kind: output, shape index: {}]  }
   0x1 LB: > { %s994_s25 = sadd.s32 4294967295, %s1235_s24   ;;  %p998_p0 = scmp.ge.s32.totalorder %s1235_s24, 1  ;;  %s1235_s24 = sphi %s1279_s24, %s17_s24  }
   0x2   : > { %p237_p1 = scmp.lt.s32.totalorder %s1235_s24, 3 }
   0x4   : > { %p238_p2 = pnand %p998_p0, %p237_p1 }
   0x5   : > { %p269_p3 = scmp.lt.s32.totalorder (!%p238_p2), %s994_s25, 1 }
   0x6   : > { %241 = sbr.rel (%p238_p2) target bundleno = 512 (0x200), region = 48 }
   0xb   : > { %v1199_v0 = vld [vmem:[%s1491_s1 + $0x38] sm:$0xff]   ;;  %v1237_v1 = vmov 0.0   ;;  %v1201_v3 = vld [vmem:[%s1491_s1 + $0x30] sm:$0xff]   ;;  %vm1238_vm0 = vmmov 0   ;;  %s1507_s25 = smov (!%p269_p3, %s994_s25), 1  ;;  %vm282_vm1 = vcmask 516096  }
   0xc   : > { %1117 = vmatprep.subr.bf16.mxu0 %v1237_v1  ;;  %1129 = vmatprep.subr.bf16.mxu1 %v1237_v1  ;;  %v1200_v2 = vld [vmem:[%s1491_s1 + $0x18] sm:$0xff]   ;;  %v1202_v4 = vld [vmem:[%s1491_s1 + $0x10] sm:$0xff]   ;;  %v1203_v5 = vld [vmem:[%s1491_s1 + $0x28] sm:$0xff]   ;;  %s1081_s13 = sshll.u32 %s1507_s25, 4  ;;  %vm283_vm2 = vsmask.f32 256 }
   0xd   : > { %1118 = vmatpush3.bf16.msra.mxu0 %v1199_v0  ;;  %1125 = vmatprep.mubr.msk.bf16.mxu0 %vm1238_vm0, %v1237_v1  ;;  %v1204_v6 = vld [vmem:[%s1491_s1 + $0x8] sm:$0xff]   ;;  %s273_s18 = scalar_lea.vmem %s1490_s0, %s1081_s13  ;;  %v285_v9 = vld [vmem:[#allocation2] sm:$0x1]  ;;  %vm1332_vm3 = vmand %vm282_vm1, %vm283_vm2  ;;  %vm288_vm4 = vsmask.f32 7938  ;;  %vm321_vm7 = vcmask 519168   ;;  %s278_s27 = scalar_lea.vmem %s1497_s7, %s1081_s13 }
   0xe   : > { %1130 = vmatpush3.bf16.msra.mxu1 %v1200_v2  ;;  %1119 = vmatprep.subr.bf16.mxu0 %v1237_v1  ;;  %v1323_v7 = vld [vmem:[%s273_s18] sm:$0xff]  ;;  %v1325_v8 = vld [vmem:[%s273_s18 + $0x8] sm:$0xff]  ;;  %v286_v16 = vsel %vm1332_vm3, 0, %v285_v9  ;;  %vm1347_vm5 = vmand %vm282_vm1, %vm288_vm4  ;;  %vm299_vm6 = vsmask.f32 4368  ;;  %vm396_vm10 = vcmask 523264  }
   0xf   : > { %1131 = vmatprep.subr.bf16.mxu1 %v1237_v1  ;;  %1137 = vmatprep.mubr.msk.bf16.mxu1 %vm1238_vm0, %v1237_v1  ;;  %v1205_v10 = vld [vmem:[%s1491_s1 + $0x20] sm:$0xff]   ;;  %v290_v12 = vld [vmem:[#allocation2 + $0x8] sm:$0x1]  ;;  %v1083_v13 = vpack.c.bf16 %v1323_v7, %v1323_v7  ;;  %v1084_v14 = vpack.c.bf16 %v1325_v8, %v1325_v8  ;;  %287 = vst [vmem:[#allocation2] sm:$0x1] %v286_v16  ;;  %vm1356_vm8 = vmor %vm283_vm2, %vm299_vm6  ;;  %vm521_vm12 = vcmask 1046528  }
  0x10   : > { %v1206_v15 = vld [vmem:[%s1491_s1] sm:$0xff]   ;;  %v291_v18 = vsel %vm1347_vm5, 0, %v290_v12  ;;  %vm1363_vm9 = vmand %vm321_vm7, %vm288_vm4  ;;  %vm359_vm11 = vsmask.f32 7424  ;;  %v1209_v46 = vld [vmem:[%s1491_s1 + $0x58] sm:$0xff]  }
  0x11   : > { %1120 = vmatpush3.bf16.msra.mxu0 %v1201_v3  ;;  %v302_v19 = vshrl.u32 %v1083_v13, 16  ;;  %v305_v20 = vshll.u32 %v1083_v13, 16  ;;  %v310_v21 = vshrl.u32 %v1084_v14, 16  ;;  %292 = vst [vmem:[#allocation2 + $0x8] sm:$0x1] %v291_v18  ;;  %v313_v22 = vshll.u32 %v1084_v14, 16 }
  0x12   : > { %1132 = vmatpush3.bf16.msra.mxu1 %v1202_v4  ;;  %1121 = vmatprep.subr.bf16.mxu0 %v1237_v1  ;;  %v1210_v48 = vld [vmem:[%s1491_s1 + $0x50] sm:$0xff]   ;;  %v1211_v50 = vld [vmem:[%s1491_s1 + $0x48] sm:$0xff]   ;;  %v1212_v52 = vld [vmem:[%s1491_s1 + $0x40] sm:$0xff]  }
  0x13   : > { %1133 = vmatprep.subr.bf16.mxu1 %v1237_v1  ;;  %v304_v24 = vrot.slane %v302_v19, 7  ;;  %v312_v25 = vrot.slane %v310_v21, 7  ;;  %v615_v56 = vld [vmem:[#allocation3] sm:$0x1]  ;;  %v618_v58 = vld [vmem:[#allocation3 + $0x8] sm:$0x1] }
  0x14   : > { %v616_v57 = vsel %vm1332_vm3, 0, %v615_v56  ;;  %v619_v59 = vsel %vm1347_vm5, 0, %v618_v58  ;;  %v1214_v60 = vld [vmem:[%s1492_s2 + $0x18] sm:$0xff]   ;;  %v1215_v61 = vld [vmem:[%s1492_s2 + $0x10] sm:$0xff]   ;;  %v1217_v63 = vld [vmem:[%s1492_s2 + $0x8] sm:$0xff]  }
  0x15   : > { %1122 = vmatpush3.bf16.msra.mxu0 %v1203_v5  ;;  %v307_v26 = vor.u32 %v305_v20, %v304_v24  ;;  %v308_v27 = vrot.slane %v304_v24, 4  ;;  %v315_v28 = vor.u32 %v313_v22, %v312_v25  ;;  %v317_v29 = vrot.slane %v312_v25, 4  ;;  %617 = vst [vmem:[#allocation3] sm:$0x1] %v616_v57  ;;  %620 = vst [vmem:[#allocation3 + $0x8] sm:$0x1] %v619_v59 }
  0x16   : > { %1134 = vmatpush3.bf16.msra.mxu1 %v1204_v6  ;;  %1123 = vmatprep.subr.bf16.mxu0 %v1237_v1  ;;  %v323_v32 = vld [vmem:[#allocation2] sm:$0xf]  ;;  %v1216_v62 = vld [vmem:[%s1492_s2 + $0x38] sm:$0xff]   ;;  %v1218_v0 = vld [vmem:[%s1492_s2 + $0x30] sm:$0xff]  }
  0x17   : > { %1135 = vmatprep.subr.bf16.mxu1 %v1237_v1  ;;  %v316_v31 = vsel %vm1356_vm8, %v308_v27, %v315_v28  ;;  %v324_v33 = vsel %vm1363_vm9, %v307_v26, %v323_v32  ;;  %v1219_v2 = vld [vmem:[%s1492_s2] sm:$0xff]   ;;  %v1220_v3 = vld [vmem:[%s1492_s2 + $0x28] sm:$0xff]   ;;  %v1224_v11 = vld [vmem:[%s1492_s2 + $0x58] sm:$0xff]  }
  0x18   : > { %327 = vst.msk [vmem:[#allocation2 + $0x4] sm:$0xf] %vm321_vm7, %v316_v31  ;;  %v328_v34 = vld [vmem:[#allocation2 + $0x8] sm:$0x1]  ;;  %325 = vst [vmem:[#allocation2] sm:$0xf] %v324_v33 }
  0x19   : > { %1124 = vmatpush3.bf16.msra.mxu0 %v1205_v10  ;;  %v329_v35 = vsel %vm1332_vm3, %v317_v29, %v328_v34  ;;  %v1222_v4 = vld [vmem:[%s1492_s2 + $0x20] sm:$0xff]  }
  0x1a   : > { %1136 = vmatpush3.bf16.msra.mxu1 %v1206_v15  ;;  %1141 = vmatprep.subr.bf16.mxu0 %v1237_v1  ;;  %330 = vst [vmem:[#allocation2 + $0x8] sm:$0x1] %v329_v35  ;;  %v1039_v18 = vld [vmem:[%s1493_s3] ss:$0 sm:$0xff] }
  0x1b   : > { %1153 = vmatprep.subr.bf16.mxu1 %v1237_v1  ;;  %v1040_v20 = vld [vmem:[%s1494_s4] ss:$0 sm:$0xff] }
  0x1f   : > { %v332_v36 = vld [vmem:[#allocation2 + $0x4] sm:$0xf]  ;;  %v331_v37 = vld [vmem:[#allocation2] sm:$0xf] }
  0x20   : > { %v1013_v38 = vcombine.low %v331_v37, %v332_v36  ;;  %v508_v49 = vld [vmem:[#allocation2] sm:$0xe] }
  0x21   : > { %v1208_v39 = vld [vmem:[#allocation2 + $0x8] ss:$0 sps:$4 sm:$0x11]   ;;  %v1033_v51 = vcombine.low %v508_v49, %v332_v36 }
  0x22   : > { %v361_v40 = vshrl.u32 %v1013_v38, 16  ;;  %v363_v41 = vshll.u32 %v1013_v38, 16  ;;  %v368_v42 = vshll.u32 %v1208_v39, 16  ;;  %1138 = vmatmul.mubr.msk.bf16.vlgmr.msra.gmra.mxu1 %vm396_vm10, %v1013_v38  ;;  %v523_v54 = vrot.slane %v1208_v39, 1  ;;  %v647_v39 = vld [vmem:[#allocation3] sm:$0xf] }
  0x23   : > { %1161 = vmatprep.mubr.msk.bf16.mxu1 %vm1238_vm0, %v1237_v1  ;;  %v522_v53 = vrot.slane %v1033_v51, 1  ;;  %1154 = vmatpush3.bf16.msra.mxu1 %v1216_v62 }
  0x24   : > { %v365_v43 = vrot.slane %v363_v41, 1  ;;  %v370_v44 = vrot.slane %v368_v42, 1  ;;  %1155 = vmatprep.subr.bf16.mxu1 %v1237_v1 }
  0x25   : > { %v524_v55 = vsel %vm521_vm12, %v522_v53, %v523_v54 }
  0x26   : > { %v366_v45 = vor.u32 %v365_v43, %v361_v40 }
  0x27   : > { %1156 = vmatpush3.bf16.msra.mxu1 %v1218_v0  ;;  %v1227_v0 = vld [vmem:[%s1492_s2 + $0x40] sm:$0xff]  }
  0x28   : > { %v371_v47 = vsel %vm359_vm11, %v366_v45, %v370_v44  ;;  %1157 = vmatprep.subr.bf16.mxu1 %v1237_v1  ;;  %v651_v45 = vld [vmem:[#allocation3 + $0x8] sm:$0x1] }
  0x29   : > { %1126 = vmatmul.mubr.msk.bf16.vlgmr.msra.gmra.mxu0 %vm396_vm10, %v371_v47 }
  0x2a   : > { %1142 = vmatpush3.bf16.msra.mxu0 %v1209_v46  ;;  %1149 = vmatprep.mubr.msk.bf16.mxu0 %vm1238_vm0, %v1237_v1 }
  0x2b   : > { %1143 = vmatprep.subr.bf16.mxu0 %v1237_v1  ;;  %1158 = vmatpush3.bf16.msra.mxu1 %v1220_v3 }
  0x2c   : > { %1159 = vmatprep.subr.bf16.mxu1 %v1237_v1 }
  0x2e   : > { %1144 = vmatpush3.bf16.msra.mxu0 %v1210_v48 }
  0x2f   : > { %1145 = vmatprep.subr.bf16.mxu0 %v1237_v1  ;;  %1160 = vmatpush3.bf16.msra.mxu1 %v1222_v4 }
  0x30   : > { %1177 = vmatprep.subr.bf16.mxu1 %v1237_v1 }
  0x32   : > { %1146 = vmatpush3.bf16.msra.mxu0 %v1211_v50 }
  0x33   : > { %1147 = vmatprep.subr.bf16.mxu0 %v1237_v1 }
  0x36   : > { %1148 = vmatpush3.bf16.msra.mxu0 %v1212_v52 }
  0x37   : > { %1165 = vmatprep.subr.bf16.mxu0 %v1237_v1 }
  0x39   : > { %1150 = vmatmul.mubr.msk.bf16.vlgmr.msra.gmra.mxu0 %vm396_vm10, %v524_v55 }
  0x3a   : > { %1173 = vmatprep.mubr.msk.bf16.mxu0 %vm1238_vm0, %v1237_v1  ;;  %1166 = vmatpush3.bf16.msra.mxu0 %v1214_v60  ;;  %v1225_v60 = vld [vmem:[%s1492_s2 + $0x50] sm:$0xff]  }
  0x3b   : > { %1167 = vmatprep.subr.bf16.mxu0 %v1237_v1 }
  0x3e   : > { %1168 = vmatpush3.bf16.msra.mxu0 %v1215_v61  ;;  %v1226_v61 = vld [vmem:[%s1492_s2 + $0x48] sm:$0xff]  }
  0x3f   : > { %1169 = vmatprep.subr.bf16.mxu0 %v1237_v1 }
  0x42   : > { %1170 = vmatpush3.bf16.msra.mxu0 %v1217_v63 }
  0x43   : > { %1171 = vmatprep.subr.bf16.mxu0 %v1237_v1 }
  0x46   : > { %1172 = vmatpush3.bf16.msra.mxu0 %v1219_v2 }
  0xe2   : > { %v501_v5 = vpop.f32.mrf.mxu1 }
  0xe4   : > { %v1139_v6 = vpop.f32.mrf.mxu1 }
  0xe6   : > { %v504_v9 = vpop.f32.mrf.mxu1 }
  0xe8   : > { %v1140_v10 = vpop.f32.mrf.mxu1 }
  0xe9   : > { %v434_v12 = vpop.f32.mrf.mxu0 }
  0xea   : > { %v502_v16 = vadd.f32 %v501_v5, %v434_v12 }
  0xeb   : > { %v1127_v13 = vpop.f32.mrf.mxu0 }
  0xed   : > { %v437_v14 = vpop.f32.mrf.mxu0 }
  0xee   : > { %v505_v22 = vadd.f32 %v504_v9, %v437_v14 }
  0xef   : > { %v1128_v15 = vpop.f32.mrf.mxu0 }
  0xf9   : > { %v586_v17 = vpop.f32.mrf.mxu0 }
  0xfa   : > { %v593_v19 = vadd.f32 %v586_v17, %v502_v16 }
  0xfb   : > { %v1151_v21 = vpop.f32.mrf.mxu0 }
  0xfc   : > { %v602_v24 = vmul.f32 %v1039_v18, %v593_v19  ;;  %v1078_v19 = vld [vmem:[%s1496_s6] ss:$0 sm:$0xff] }
  0xfd   : > { %v589_v25 = vpop.f32.mrf.mxu0 }
  0xfe   : > { %v611_v26 = vadd.f32 %v1040_v20, %v602_v24  ;;  %v594_v27 = vadd.f32 %v589_v25, %v505_v22 }
  0xff   : > { %v1152_v28 = vpop.f32.mrf.mxu0 }
 0x100   : > { %v613_v29 = vmax.f32 %v611_v26, 0.0  ;;  %v603_v31 = vmul.f32 %v1039_v18, %v594_v27 }
 0x102   : > { %v1085_v32 = vpack.c.bf16 %v613_v29, %v613_v29  ;;  %v612_v33 = vadd.f32 %v1040_v20, %v603_v31 }
 0x104   : > { %v628_v34 = vshrl.u32 %v1085_v32, 16  ;;  %v614_v35 = vmax.f32 %v612_v33, 0.0  ;;  %v631_v37 = vshll.u32 %v1085_v32, 16 }
 0x106   : > { %v630_v36 = vrot.slane %v628_v34, 7  ;;  %v1086_v38 = vpack.c.bf16 %v614_v35, %v614_v35 }
 0x108   : > { %v633_v40 = vor.u32 %v631_v37, %v630_v36  ;;  %v636_v41 = vshrl.u32 %v1086_v38, 16  ;;  %v639_v44 = vshll.u32 %v1086_v38, 16  ;;  %v634_v46 = vrot.slane %v630_v36, 4 }
 0x10a   : > { %v648_v42 = vsel %vm1363_vm9, %v633_v40, %v647_v39  ;;  %v638_v43 = vrot.slane %v636_v41, 7 }
 0x10b   : > { %649 = vst [vmem:[#allocation3] sm:$0xf] %v648_v42 }
 0x10c   : > { %v641_v47 = vor.u32 %v639_v44, %v638_v43  ;;  %v643_v48 = vrot.slane %v638_v43, 4 }
 0x10e   : > { %v642_v49 = vsel %vm1356_vm8, %v634_v46, %v641_v47  ;;  %v652_v50 = vsel %vm1332_vm3, %v643_v48, %v651_v45 }
 0x10f   : > { %650 = vst.msk [vmem:[#allocation3 + $0x4] sm:$0xf] %vm321_vm7, %v642_v49  ;;  %653 = vst [vmem:[#allocation3 + $0x8] sm:$0x1] %v652_v50 }
 0x112   : > { %v654_v51 = vld [vmem:[#allocation3] sm:$0xf] }
 0x113   : > { %v829_v62 = vld [vmem:[#allocation3] sm:$0xe] }
 0x116   : > { %v655_v52 = vld [vmem:[#allocation3 + $0x4] sm:$0xf]  ;;  %v1223_v53 = vld [vmem:[#allocation3 + $0x8] ss:$0 sps:$4 sm:$0x11]  }
 0x117   : > { %v1051_v30 = vcombine.low %v654_v51, %v655_v52  ;;  %v690_v55 = vshll.u32 %v1223_v53, 16  ;;  %v1071_v63 = vcombine.low %v829_v62, %v655_v52  ;;  %v843_v3 = vrot.slane %v1223_v53, 1 }
 0x119   : > { %1174 = vmatmul.mubr.msk.bf16.vlgmr.msra.gmra.mxu0 %vm396_vm10, %v1051_v30  ;;  %v685_v54 = vshll.u32 %v1051_v30, 16  ;;  %v683_v56 = vshrl.u32 %v1051_v30, 16  ;;  %v692_v59 = vrot.slane %v690_v55, 1  ;;  %v842_v2 = vrot.slane %v1071_v63, 1 }
 0x11b   : > { %v687_v57 = vrot.slane %v685_v54, 1  ;;  %v844_v4 = vsel %vm521_vm12, %v842_v2, %v843_v3 }
 0x11d   : > { %v688_v58 = vor.u32 %v687_v57, %v683_v56 }
 0x11f   : > { %v693_v23 = vsel %vm359_vm11, %v688_v58, %v692_v59 }
 0x120   : > { %1162 = vmatmul.mubr.msk.bf16.vlgmr.msra.gmra.mxu1 %vm396_vm10, %v693_v23 }
 0x121   : > { %1178 = vmatpush3.bf16.msra.mxu1 %v1224_v11  ;;  %1185 = vmatprep.mubr.msk.bf16.mxu1 %vm1238_vm0, %v1237_v1 }
 0x122   : > { %1179 = vmatprep.subr.bf16.mxu1 %v1237_v1 }
 0x125   : > { %1180 = vmatpush3.bf16.msra.mxu1 %v1225_v60 }
 0x126   : > { %1181 = vmatprep.subr.bf16.mxu1 %v1237_v1 }
 0x129   : > { %1182 = vmatpush3.bf16.msra.mxu1 %v1226_v61 }
 0x12a   : > { %1183 = vmatprep.subr.bf16.mxu1 %v1237_v1  ;;  %v1077_v1 = vld [vmem:[%s1495_s5] ss:$0 sm:$0xff] }
 0x12d   : > { %1184 = vmatpush3.bf16.msra.mxu1 %v1227_v0 }
 0x130   : > { %1186 = vmatmul.mubr.msk.bf16.vlgmr.msra.gmra.mxu1 %vm396_vm10, %v844_v4 }
 0x1d9   : > { %v822_v5 = vpop.f32.mrf.mxu0 }
 0x1db   : > { %v1175_v6 = vpop.f32.mrf.mxu0 }
 0x1dd   : > { %v825_v9 = vpop.f32.mrf.mxu0 }
 0x1df   : > { %v1176_v10 = vpop.f32.mrf.mxu0 }
 0x1e0   : > { %v755_v12 = vpop.f32.mrf.mxu1 }
 0x1e1   : > { %v823_v16 = vadd.f32 %v822_v5, %v755_v12 }
 0x1e2   : > { %v1163_v13 = vpop.f32.mrf.mxu1 }
 0x1e4   : > { %v758_v14 = vpop.f32.mrf.mxu1 }
 0x1e5   : > { %v826_v21 = vadd.f32 %v825_v9, %v758_v14 }
 0x1e6   : > { %v1164_v15 = vpop.f32.mrf.mxu1 }
 0x1f0   : > { %v906_v17 = vpop.f32.mrf.mxu1 }
 0x1f1   : > { %v913_v18 = vadd.f32 %v906_v17, %v823_v16 }
 0x1f2   : > { %v1187_v20 = vpop.f32.mrf.mxu1 }
 0x1f3   : > { %v922_v22 = vmul.f32 %v1077_v1, %v913_v18 }
 0x1f4   : > { %v909_v24 = vpop.f32.mrf.mxu1 }
 0x1f5   : > { %v931_v25 = vadd.f32 %v1078_v19, %v922_v22  ;;  %v914_v26 = vadd.f32 %v909_v24, %v826_v21 }
 0x1f6   : > { %v1188_v27 = vpop.f32.mrf.mxu1 }
 0x1f7   : > { %v933_v28 = vadd.f32 %v931_v25, %v1323_v7  ;;  %v923_v29 = vmul.f32 %v1077_v1, %v914_v26 }
 0x1f9   : > { %v935_v31 = vmax.f32 %v933_v28, 0.0  ;;  %v932_v32 = vadd.f32 %v1078_v19, %v923_v29 }
 0x1fb   : > { %937 = vst.msk [vmem:[%s278_s27] sm:$0xff] %vm396_vm10, %v935_v31  ;;  %v934_v33 = vadd.f32 %v932_v32, %v1325_v8 }
 0x1fd   : > { %v936_v34 = vmax.f32 %v934_v33, 0.0 }
 0x1ff   : > { %938 = vst.msk [vmem:[%s278_s27 + $0x8] sm:$0xff] %vm396_vm10, %v936_v34 }
 0x200 PF: > { %s17_s24 = sadd.s32 1, %s1235_s24  }
 0x201   : > { %p14_p4 = scmp.ge.s32.totalorder %s17_s24, 4  }
 0x203   :  { %16 = sbr.rel (!%p14_p4) target bundleno = 1 (0x1), region = 82 }

</bundles_post_ra>
